<compile_context>
chip_gen: v6e
topology: v6e:2x2x1
jax: 0.10.0
libtpu: 0.0.40
codegen_flags: <defaults>
</compile_context>

<pallas_src>
import functools

import jax
import jax.numpy as jnp
from jax import lax
from jax.experimental import pallas as pl
from jax.experimental.pallas import tpu as pltpu  # noqa: F401  (TPU backend)


# ----------------------------------------------------------------------------
# Fused kernel: both MLPs + score matmul in one body.
# ----------------------------------------------------------------------------
def _separable_critic_kernel(*refs, n_linear, activation):
    """refs = (x, y, gW0, gb0, ..., gW_{L-1}, gb_{L-1},
                      hW0, hb0, ..., hW_{L-1}, hb_{L-1}, o)."""
    x_ref, y_ref = refs[0], refs[1]
    g_refs = refs[2: 2 + 2 * n_linear]
    h_refs = refs[2 + 2 * n_linear: 2 + 4 * n_linear]
    o_ref = refs[-1]

    def run_mlp(v, param_refs):
        # Unrolled Python loop over layers: intermediates never leave vregs.
        for i in range(n_linear):
            w = param_refs[2 * i][...]        # [in, out]
            b = param_refs[2 * i + 1][...]    # [1, out] -> broadcasts over rows
            v = jnp.dot(v, w, preferred_element_type=jnp.float32) + b
            if i < n_linear - 1:              # no activation after final Linear
                if activation == "relu":
                    v = jnp.maximum(v, 0.0)
                elif activation == "tanh":
                    v = jnp.tanh(v)
        return v

    gx = run_mlp(x_ref[...], g_refs)          # [Bx, E]
    hy = run_mlp(y_ref[...], h_refs)          # [By, E]

    # scores = h(y) @ g(x).T  -- transpose folded into dot_general contraction.
    scores = lax.dot_general(
        hy, gx,
        dimension_numbers=(((1,), (1,)), ((), ())),
        preferred_element_type=jnp.float32,
    )
    o_ref[...] = scores.astype(o_ref.dtype)


# ----------------------------------------------------------------------------
# Wrapper
# ----------------------------------------------------------------------------
def _full_block_spec(shape):
    # Gridless call: every operand is a single whole-array VMEM block.
    return pl.BlockSpec(shape, lambda: (0,) * len(shape))


def separable_critic_forward(g_params, h_params, x, y, activation):
    """g_params / h_params: list of (W [in,out], b [out]) per linear layer."""
    n_linear = len(g_params)
    assert len(h_params) == n_linear

    Bx, _ = x.shape
    By, _ = y.shape
    embed_dim = g_params[-1][0].shape[1]
    assert h_params[-1][0].shape[1] == embed_dim

    # Flatten inputs: x, y, then g weights/biases, then h weights/biases.
    flat_inputs = [x, y]
    for params in (g_params, h_params):
        for w, b in params:
            flat_inputs.append(w)
            flat_inputs.append(b.reshape(1, -1))  # [1, out] for lane-wise bcast

    in_specs = [_full_block_spec(a.shape) for a in flat_inputs]

    kernel = functools.partial(
        _separable_critic_kernel, n_linear=n_linear, activation=activation
    )

    return pl.pallas_call(
        kernel,
        out_shape=jax.ShapeDtypeStruct((By, Bx), jnp.float32),
        in_specs=in_specs,
        out_specs=_full_block_spec((By, Bx)),
    )(*flat_inputs)


# ----------------------------------------------------------------------------
# Parameters (matches nn.Linear default init: U(-1/sqrt(fan_in), 1/sqrt(fan_in)))
# ----------------------------------------------------------------------------
def init_mlp_params(key, dim, hidden_dim, output_dim, layers):
    """Matches mlp(): Linear(dim,h)+act, layers x (Linear(h,h)+act), Linear(h,out)."""
    sizes = [(dim, hidden_dim)] + [(hidden_dim, hidden_dim)] * layers + [
        (hidden_dim, output_dim)
    ]
    params = []
    for fan_in, fan_out in sizes:
        key, kw, kb = jax.random.split(key, 3)
        scale = 1.0 / jnp.sqrt(jnp.float32(fan_in))
        w = jax.random.uniform(kw, (fan_in, fan_out), jnp.float32, -scale, scale)
        b = jax.random.uniform(kb, (fan_out,), jnp.float32, -scale, scale)
        params.append((w, b))
    return params


# ----------------------------------------------------------------------------
# Main
# ----------------------------------------------------------------------------
if __name__ == "__main__":
    # Module config (small, consistent with SeparableCritic(dim, hidden, embed, layers, act))
    dim, hidden_dim, embed_dim, layers, activation = 16, 32, 16, 2, "relu"
    batch_x, batch_y = 8, 8

    key = jax.random.PRNGKey(0)
    key, kg, kh, kx, ky = jax.random.split(key, 5)

    g_params = init_mlp_params(kg, dim, hidden_dim, embed_dim, layers)
    h_params = init_mlp_params(kh, dim, hidden_dim, embed_dim, layers)

    x = jax.random.normal(kx, (batch_x, dim), jnp.float32)
    y = jax.random.normal(ky, (batch_y, dim), jnp.float32)

    fwd = jax.jit(
        functools.partial(separable_critic_forward, activation=activation)
    )
    scores = fwd(g_params, h_params, x, y)
    scores = jax.block_until_ready(scores)

    # Pure-JAX reference check
    def ref_mlp(params, v):
        n = len(params)
        for i, (w, b) in enumerate(params):
            v = v @ w + b
            if i < n - 1:
                v = jnp.maximum(v, 0.0) if activation == "relu" else jnp.tanh(v)
        return v

    ref = ref_mlp(h_params, y) @ ref_mlp(g_params, x).T
    assert scores.shape == (batch_y, batch_x)
    assert jnp.allclose(scores, ref, atol=1e-5, rtol=1e-5)

    print("KERNEL_OK")
</pallas_src>

<mosaic_0001>
module attributes {stable_mosaic.version = 11 : i64} {
  func.func @_separable_critic_kernel(%arg0: memref<8x16xf32, #tpu.memory_space<vmem>>, %arg1: memref<8x16xf32, #tpu.memory_space<vmem>>, %arg2: memref<16x32xf32, #tpu.memory_space<vmem>>, %arg3: memref<1x32xf32, #tpu.memory_space<vmem>>, %arg4: memref<32x32xf32, #tpu.memory_space<vmem>>, %arg5: memref<1x32xf32, #tpu.memory_space<vmem>>, %arg6: memref<32x32xf32, #tpu.memory_space<vmem>>, %arg7: memref<1x32xf32, #tpu.memory_space<vmem>>, %arg8: memref<32x16xf32, #tpu.memory_space<vmem>>, %arg9: memref<1x16xf32, #tpu.memory_space<vmem>>, %arg10: memref<16x32xf32, #tpu.memory_space<vmem>>, %arg11: memref<1x32xf32, #tpu.memory_space<vmem>>, %arg12: memref<32x32xf32, #tpu.memory_space<vmem>>, %arg13: memref<1x32xf32, #tpu.memory_space<vmem>>, %arg14: memref<32x32xf32, #tpu.memory_space<vmem>>, %arg15: memref<1x32xf32, #tpu.memory_space<vmem>>, %arg16: memref<32x16xf32, #tpu.memory_space<vmem>>, %arg17: memref<1x16xf32, #tpu.memory_space<vmem>>, %arg18: memref<8x8xf32, #tpu.memory_space<vmem>>) attributes {dimension_semantics = [], scalar_prefetch = 0 : i64, scratch_operands = 0 : i64, tpu.core_type = #tpu.core_type<tc>} {
    %c0 = arith.constant 0 : index
    %c0_0 = arith.constant 0 : index
    %0 = vector.load %arg0[%c0, %c0_0] : memref<8x16xf32, #tpu.memory_space<vmem>>, vector<8x16xf32>
    %c0_1 = arith.constant 0 : index
    %c0_2 = arith.constant 0 : index
    %1 = vector.load %arg2[%c0_1, %c0_2] : memref<16x32xf32, #tpu.memory_space<vmem>>, vector<16x32xf32>
    %c0_3 = arith.constant 0 : index
    %c0_4 = arith.constant 0 : index
    %2 = vector.load %arg3[%c0_3, %c0_4] : memref<1x32xf32, #tpu.memory_space<vmem>>, vector<1x32xf32>
    %cst = arith.constant dense<0.000000e+00> : vector<8x32xf32>
    %3 = tpu.matmul %0, %1, %cst {dimension_numbers = #tpu.dot_dimension_numbers<[1], [0], [0], [1], [0, 0, 1, 1], [], []>} : vector<8x16xf32>, vector<16x32xf32>, vector<8x32xf32> -> vector<8x32xf32>
    %4 = vector.broadcast %2 : vector<1x32xf32> to vector<8x32xf32>
    %5 = arith.addf %3, %4 : vector<8x32xf32>
    %cst_5 = arith.constant 0.000000e+00 : f32
    %6 = vector.broadcast %cst_5 : f32 to vector<8x32xf32>
    %7 = arith.maximumf %5, %6 : vector<8x32xf32>
    %c0_6 = arith.constant 0 : index
    %c0_7 = arith.constant 0 : index
    %8 = vector.load %arg4[%c0_6, %c0_7] : memref<32x32xf32, #tpu.memory_space<vmem>>, vector<32x32xf32>
    %c0_8 = arith.constant 0 : index
    %c0_9 = arith.constant 0 : index
    %9 = vector.load %arg5[%c0_8, %c0_9] : memref<1x32xf32, #tpu.memory_space<vmem>>, vector<1x32xf32>
    %cst_10 = arith.constant dense<0.000000e+00> : vector<8x32xf32>
    %10 = tpu.matmul %7, %8, %cst_10 {dimension_numbers = #tpu.dot_dimension_numbers<[1], [0], [0], [1], [0, 0, 1, 1], [], []>} : vector<8x32xf32>, vector<32x32xf32>, vector<8x32xf32> -> vector<8x32xf32>
    %11 = vector.broadcast %9 : vector<1x32xf32> to vector<8x32xf32>
    %12 = arith.addf %10, %11 : vector<8x32xf32>
    %cst_11 = arith.constant 0.000000e+00 : f32
    %13 = vector.broadcast %cst_11 : f32 to vector<8x32xf32>
    %14 = arith.maximumf %12, %13 : vector<8x32xf32>
    %c0_12 = arith.constant 0 : index
    %c0_13 = arith.constant 0 : index
    %15 = vector.load %arg6[%c0_12, %c0_13] : memref<32x32xf32, #tpu.memory_space<vmem>>, vector<32x32xf32>
    %c0_14 = arith.constant 0 : index
    %c0_15 = arith.constant 0 : index
    %16 = vector.load %arg7[%c0_14, %c0_15] : memref<1x32xf32, #tpu.memory_space<vmem>>, vector<1x32xf32>
    %cst_16 = arith.constant dense<0.000000e+00> : vector<8x32xf32>
    %17 = tpu.matmul %14, %15, %cst_16 {dimension_numbers = #tpu.dot_dimension_numbers<[1], [0], [0], [1], [0, 0, 1, 1], [], []>} : vector<8x32xf32>, vector<32x32xf32>, vector<8x32xf32> -> vector<8x32xf32>
    %18 = vector.broadcast %16 : vector<1x32xf32> to vector<8x32xf32>
    %19 = arith.addf %17, %18 : vector<8x32xf32>
    %cst_17 = arith.constant 0.000000e+00 : f32
    %20 = vector.broadcast %cst_17 : f32 to vector<8x32xf32>
    %21 = arith.maximumf %19, %20 : vector<8x32xf32>
    %c0_18 = arith.constant 0 : index
    %c0_19 = arith.constant 0 : index
    %22 = vector.load %arg8[%c0_18, %c0_19] : memref<32x16xf32, #tpu.memory_space<vmem>>, vector<32x16xf32>
    %c0_20 = arith.constant 0 : index
    %c0_21 = arith.constant 0 : index
    %23 = vector.load %arg9[%c0_20, %c0_21] : memref<1x16xf32, #tpu.memory_space<vmem>>, vector<1x16xf32>
    %cst_22 = arith.constant dense<0.000000e+00> : vector<8x16xf32>
    %24 = tpu.matmul %21, %22, %cst_22 {dimension_numbers = #tpu.dot_dimension_numbers<[1], [0], [0], [1], [0, 0, 1, 1], [], []>} : vector<8x32xf32>, vector<32x16xf32>, vector<8x16xf32> -> vector<8x16xf32>
    %25 = vector.broadcast %23 : vector<1x16xf32> to vector<8x16xf32>
    %26 = arith.addf %24, %25 : vector<8x16xf32>
    %c0_23 = arith.constant 0 : index
    %c0_24 = arith.constant 0 : index
    %27 = vector.load %arg1[%c0_23, %c0_24] : memref<8x16xf32, #tpu.memory_space<vmem>>, vector<8x16xf32>
    %c0_25 = arith.constant 0 : index
    %c0_26 = arith.constant 0 : index
    %28 = vector.load %arg10[%c0_25, %c0_26] : memref<16x32xf32, #tpu.memory_space<vmem>>, vector<16x32xf32>
    %c0_27 = arith.constant 0 : index
    %c0_28 = arith.constant 0 : index
    %29 = vector.load %arg11[%c0_27, %c0_28] : memref<1x32xf32, #tpu.memory_space<vmem>>, vector<1x32xf32>
    %cst_29 = arith.constant dense<0.000000e+00> : vector<8x32xf32>
    %30 = tpu.matmul %27, %28, %cst_29 {dimension_numbers = #tpu.dot_dimension_numbers<[1], [0], [0], [1], [0, 0, 1, 1], [], []>} : vector<8x16xf32>, vector<16x32xf32>, vector<8x32xf32> -> vector<8x32xf32>
    %31 = vector.broadcast %29 : vector<1x32xf32> to vector<8x32xf32>
    %32 = arith.addf %30, %31 : vector<8x32xf32>
    %cst_30 = arith.constant 0.000000e+00 : f32
    %33 = vector.broadcast %cst_30 : f32 to vector<8x32xf32>
    %34 = arith.maximumf %32, %33 : vector<8x32xf32>
    %c0_31 = arith.constant 0 : index
    %c0_32 = arith.constant 0 : index
    %35 = vector.load %arg12[%c0_31, %c0_32] : memref<32x32xf32, #tpu.memory_space<vmem>>, vector<32x32xf32>
    %c0_33 = arith.constant 0 : index
    %c0_34 = arith.constant 0 : index
    %36 = vector.load %arg13[%c0_33, %c0_34] : memref<1x32xf32, #tpu.memory_space<vmem>>, vector<1x32xf32>
    %cst_35 = arith.constant dense<0.000000e+00> : vector<8x32xf32>
    %37 = tpu.matmul %34, %35, %cst_35 {dimension_numbers = #tpu.dot_dimension_numbers<[1], [0], [0], [1], [0, 0, 1, 1], [], []>} : vector<8x32xf32>, vector<32x32xf32>, vector<8x32xf32> -> vector<8x32xf32>
    %38 = vector.broadcast %36 : vector<1x32xf32> to vector<8x32xf32>
    %39 = arith.addf %37, %38 : vector<8x32xf32>
    %cst_36 = arith.constant 0.000000e+00 : f32
    %40 = vector.broadcast %cst_36 : f32 to vector<8x32xf32>
    %41 = arith.maximumf %39, %40 : vector<8x32xf32>
    %c0_37 = arith.constant 0 : index
    %c0_38 = arith.constant 0 : index
    %42 = vector.load %arg14[%c0_37, %c0_38] : memref<32x32xf32, #tpu.memory_space<vmem>>, vector<32x32xf32>
    %c0_39 = arith.constant 0 : index
    %c0_40 = arith.constant 0 : index
    %43 = vector.load %arg15[%c0_39, %c0_40] : memref<1x32xf32, #tpu.memory_space<vmem>>, vector<1x32xf32>
    %cst_41 = arith.constant dense<0.000000e+00> : vector<8x32xf32>
    %44 = tpu.matmul %41, %42, %cst_41 {dimension_numbers = #tpu.dot_dimension_numbers<[1], [0], [0], [1], [0, 0, 1, 1], [], []>} : vector<8x32xf32>, vector<32x32xf32>, vector<8x32xf32> -> vector<8x32xf32>
    %45 = vector.broadcast %43 : vector<1x32xf32> to vector<8x32xf32>
    %46 = arith.addf %44, %45 : vector<8x32xf32>
    %cst_42 = arith.constant 0.000000e+00 : f32
    %47 = vector.broadcast %cst_42 : f32 to vector<8x32xf32>
    %48 = arith.maximumf %46, %47 : vector<8x32xf32>
    %c0_43 = arith.constant 0 : index
    %c0_44 = arith.constant 0 : index
    %49 = vector.load %arg16[%c0_43, %c0_44] : memref<32x16xf32, #tpu.memory_space<vmem>>, vector<32x16xf32>
    %c0_45 = arith.constant 0 : index
    %c0_46 = arith.constant 0 : index
    %50 = vector.load %arg17[%c0_45, %c0_46] : memref<1x16xf32, #tpu.memory_space<vmem>>, vector<1x16xf32>
    %cst_47 = arith.constant dense<0.000000e+00> : vector<8x16xf32>
    %51 = tpu.matmul %48, %49, %cst_47 {dimension_numbers = #tpu.dot_dimension_numbers<[1], [0], [0], [1], [0, 0, 1, 1], [], []>} : vector<8x32xf32>, vector<32x16xf32>, vector<8x16xf32> -> vector<8x16xf32>
    %52 = vector.broadcast %50 : vector<1x16xf32> to vector<8x16xf32>
    %53 = arith.addf %51, %52 : vector<8x16xf32>
    %cst_48 = arith.constant dense<0.000000e+00> : vector<8x8xf32>
    %54 = tpu.matmul %53, %26, %cst_48 {dimension_numbers = #tpu.dot_dimension_numbers<[1], [1], [0], [0], [0, 0, 1, 0], [], []>} : vector<8x16xf32>, vector<8x16xf32>, vector<8x8xf32> -> vector<8x8xf32>
    %c0_49 = arith.constant 0 : index
    %c0_50 = arith.constant 0 : index
    %55 = vector.load %arg18[%c0_49, %c0_50] : memref<8x8xf32, #tpu.memory_space<vmem>>, vector<8x8xf32>
    tpu.vector_store %arg18[%c0_49, %c0_50], %54 {strides = array<i32>} : memref<8x8xf32, #tpu.memory_space<vmem>>, vector<8x8xf32>,
    return
  }
}

</mosaic_0001>

<bundles_post_ra>
// kernel: separable_critic_forward.1
= control target key start
LH: loop header
LB: loop body
LE: loop exit
PB: predicated region body
PF: predicated region fallthrough
CT: control target
= control target key end

     0   :  { %s1630_s0 = inlined_call_operand.vmem [shape: f32[8,16], index: 0, kind: input, shape index: {}]   ;;  %s1631_s1 = inlined_call_operand.hbm [shape: f32[8,16], index: 1, kind: input, shape index: {}]   ;;  %s1632_s2 = inlined_call_operand.hbm [shape: f32[16,32], index: 2, kind: input, shape index: {}]   ;;  %s1633_s3 = inlined_call_operand.hbm [shape: f32[1,32], index: 3, kind: input, shape index: {}]   ;;  %s1634_s4 = inlined_call_operand.vmem [shape: f32[32,32], index: 4, kind: input, shape index: {}]   ;;  %s1635_s5 = inlined_call_operand.hbm [shape: f32[1,32], index: 5, kind: input, shape index: {}]   ;;  %s1636_s6 = inlined_call_operand.vmem [shape: f32[32,32], index: 6, kind: input, shape index: {}]   ;;  %s1637_s7 = inlined_call_operand.hbm [shape: f32[1,32], index: 7, kind: input, shape index: {}]   ;;  %s1638_s8 = inlined_call_operand.vmem [shape: f32[32,16], index: 8, kind: input, shape index: {}]   ;;  %s1639_s9 = inlined_call_operand.hbm [shape: f32[1,16], index: 9, kind: input, shape index: {}]   ;;  %s1640_s10 = inlined_call_operand.hbm [shape: f32[16,32], index: 10, kind: input, shape index: {}]   ;;  %s1641_s11 = inlined_call_operand.hbm [shape: f32[1,32], index: 11, kind: input, shape index: {}]   ;;  %s1642_s12 = inlined_call_operand.vmem [shape: f32[32,32], index: 12, kind: input, shape index: {}]   ;;  %s1643_s13 = inlined_call_operand.hbm [shape: f32[1,32], index: 13, kind: input, shape index: {}]   ;;  %s1644_s14 = inlined_call_operand.vmem [shape: f32[32,32], index: 14, kind: input, shape index: {}]   ;;  %s1645_s15 = inlined_call_operand.hbm [shape: f32[1,32], index: 15, kind: input, shape index: {}]   ;;  %s1646_s16 = inlined_call_operand.vmem [shape: f32[32,16], index: 16, kind: input, shape index: {}]   ;;  %s1647_s17 = inlined_call_operand.vmem [shape: f32[1,16], index: 17, kind: input, shape index: {}]   ;;  %s1648_s18 = inlined_call_operand.hbm [shape: f32[8,8], index: 18, kind: output, shape index: {}]  }
   0x1   :  { %1649 = sst [smem:[#allocation27_spill]] %s1630_s0 }
   0x2   :  { %1650 = sst [smem:[#allocation28_spill]] %s1631_s1 }
   0x3   :  { %1651 = sst [smem:[#allocation29_spill]] %s1632_s2 }
   0x4   :  { %23 = vsyncpa [#allocation3], 0 }
   0x5   :  { %24 = vsyncpa [#allocation6], 0 }
   0x6   :  { %25 = vsyncpa [#allocation9], 0 }
   0x7   :  { %26 = vsyncpa [#allocation12], 0 }
   0x8   :  { %27 = vsyncpa [#allocation15], 0 }
   0x9   :  { %28 = vsyncpa [#allocation18], 0 }
   0xa   :  { %29 = vsyncpa [#allocation4], 0  ;;  %s1346_s27 = smov [#allocation5]  }
   0xb   :  { %s47_s28 = sshll.u32 %s1346_s27, 4  ;;  %s48_s28 = int_to_ptr.vmem [resolvable:$true] %s47_s28 }
   0xc   :  { %s1120_s29 = scalar_lea.vmem %s48_s28, 256  ;;  %p1125_p1 = scmp.lt.s32.totalorder %s48_s28, %s48_s28 }
   0xd   :  { %p1121_p0 = scmp.ne.s32.totalorder %s48_s28, %s1120_s29  ;;  %p1126_p2 = scmp.lt.s32.totalorder %s1120_s29, %s1120_s29 }
   0xf   :  { %p1127_p3 = por %p1126_p2, %p1125_p1 }
  0x11   :  { %p1128_p4 = pnand %p1127_p3, %p1121_p0 }
  0x13   :  { %1131 = shalt.err (!%p1128_p4)
}
  0x14   :  { %s1347_s30 = smov 128   ;;  %s1348_s0 = smov 8  }
  0x15   :  { %s1652_s20 = sld [smem:[#allocation29_spill]]  ;;  %s1349_s21 = smov [#allocation8]  }
  0x16   :  { %s72_s22 = sshll.u32 %s1349_s21, 4  ;;  %s1350_s2 = smov [#allocation11]   ;;  %s73_s22 = int_to_ptr.vmem [resolvable:$true] %s72_s22 }
  0x17   :  { %s96_s23 = sshll.u32 %s1350_s2, 4  ;;  %s1140_s24 = scalar_lea.vmem %s73_s22, 16  ;;  %s97_s23 = int_to_ptr.vmem [resolvable:$true] %s96_s23 }
  0x18   :  { %p1141_p5 = scmp.ne.s32.totalorder %s73_s22, %s1140_s24  ;;  %s1144_s25 = scalar_lea.vmem %s73_s22, 32 }
  0x19   :  { %p1145_p6 = scmp.lt.s32.totalorder %s73_s22, %s73_s22  ;;  %p1146_p7 = scmp.lt.s32.totalorder %s1144_s25, %s1140_s24 }
  0x1b   :  { %53 = dma.hbm_to_vmem [thread:$0]  %s1652_s20, 256, %s48_s28, [#allocation6], %s1347_s30, %s1347_s30, %s1348_s0  }
  0x1c   :  { %p1147_p8 = por %p1146_p7, %p1145_p6 }
  0x1e   :  { %p1148_p9 = pnand %p1147_p8, %p1141_p5 }
  0x20   :  { %1151 = shalt.err (!%p1148_p9)
}
  0x21   :  { %75 = dma.hbm_to_vmem [thread:$0]  %s1635_s5, 16, %s73_s22, [#allocation9]  }
  0x22   :  { %s1160_s29 = scalar_lea.vmem %s97_s23, 16  ;;  %s1164_s28 = scalar_lea.vmem %s97_s23, 32 }
  0x23   :  { %p1161_p10 = scmp.ne.s32.totalorder %s97_s23, %s1160_s29  ;;  %p1165_p11 = scmp.lt.s32.totalorder %s97_s23, %s97_s23 }
  0x24   :  { %p1166_p12 = scmp.lt.s32.totalorder %s1164_s28, %s1160_s29 }
  0x26   :  { %p1167_p13 = por %p1166_p12, %p1165_p11 }
  0x28   :  { %p1168_p0 = pnand %p1167_p13, %p1161_p10 }
  0x2a   :  { %1171 = shalt.err (!%p1168_p0)
}
  0x2b   :  { %99 = dma.hbm_to_vmem [thread:$0]  %s1639_s9, 16, %s97_s23, [#allocation12]  }
  0x2c   :  { %s1351_s20 = smov [#allocation14]   ;;  %s1352_s2 = smov [#allocation2]  }
  0x2d   :  { %s118_s21 = sshll.u32 %s1351_s20, 4  ;;  %s38_s24 = sshll.u32 %s1352_s2, 4  ;;  %s119_s21 = int_to_ptr.vmem [resolvable:$true] %s118_s21  ;;  %s39_s24 = int_to_ptr.vmem [resolvable:$true] %s38_s24 }
  0x2e   :  { %s1180_s25 = scalar_lea.vmem %s119_s21, 16  ;;  %s1184_s5 = scalar_lea.vmem %s119_s21, 32 }
  0x2f   :  { %p1181_p1 = scmp.ne.s32.totalorder %s119_s21, %s1180_s25  ;;  %p1185_p2 = scmp.lt.s32.totalorder %s119_s21, %s119_s21 }
  0x30   :  { %p1186_p3 = scmp.lt.s32.totalorder %s1184_s5, %s1180_s25 }
  0x32   :  { %p1187_p4 = por %p1186_p3, %p1185_p2 }
  0x34   :  { %p1188_p5 = pnand %p1187_p4, %p1181_p1 }
  0x36   :  { %1191 = shalt.err (!%p1188_p5)
}
  0x37   :  { %121 = dma.hbm_to_vmem [thread:$0]  %s1641_s11, 16, %s119_s21, [#allocation15]  }
  0x38   :  { %s1200_s27 = scalar_lea.vmem %s39_s24, 128  ;;  %p1205_p7 = scmp.lt.s32.totalorder %s39_s24, %s39_s24 }
  0x39   :  { %p1201_p6 = scmp.ne.s32.totalorder %s39_s24, %s1200_s27  ;;  %p1206_p8 = scmp.lt.s32.totalorder %s1200_s27, %s1200_s27 }
  0x3b   :  { %p1207_p9 = por %p1206_p8, %p1205_p7 }
  0x3d   :  { %p1208_p10 = pnand %p1207_p9, %p1201_p6 }
  0x3f   :  { %1211 = shalt.err (!%p1208_p10)
}
  0x40   :  { %s1653_s29 = sld [smem:[#allocation28_spill]]  ;;  %s1353_s28 = smov [#allocation7]  }
  0x41   :  { %s60_s19 = sshll.u32 %s1353_s28, 4  ;;  %s1354_s1 = smov [#allocation10]   ;;  %s61_s19 = int_to_ptr.vmem [resolvable:$true] %s60_s19 }
  0x42   :  { %s84_s20 = sshll.u32 %s1354_s1, 4  ;;  %s1220_s2 = scalar_lea.vmem %s61_s19, 16  ;;  %s85_s20 = int_to_ptr.vmem [resolvable:$true] %s84_s20 }
  0x43   :  { %p1221_p11 = scmp.ne.s32.totalorder %s61_s19, %s1220_s2  ;;  %s1224_s11 = scalar_lea.vmem %s61_s19, 32 }
  0x44   :  { %p1225_p12 = scmp.lt.s32.totalorder %s61_s19, %s61_s19  ;;  %p1226_p13 = scmp.lt.s32.totalorder %s1224_s11, %s1220_s2 }
  0x46   :  { %41 = dma.hbm_to_vmem [thread:$0]  %s1653_s29, 128, %s39_s24, [#allocation3]  }
  0x47   :  { %p1227_p0 = por %p1226_p13, %p1225_p12 }
  0x49   :  { %p1228_p1 = pnand %p1227_p0, %p1221_p11 }
  0x4b   :  { %1231 = shalt.err (!%p1228_p1)
}
  0x4c   :  { %63 = dma.hbm_to_vmem [thread:$0]  %s1633_s3, 16, %s61_s19, [#allocation6]  }
  0x4d   :  { %s1240_s5 = scalar_lea.vmem %s85_s20, 16  ;;  %s1244_s24 = scalar_lea.vmem %s85_s20, 32 }
  0x4e   :  { %p1241_p2 = scmp.ne.s32.totalorder %s85_s20, %s1240_s5  ;;  %p1245_p3 = scmp.lt.s32.totalorder %s85_s20, %s85_s20 }
  0x4f   :  { %p1246_p4 = scmp.lt.s32.totalorder %s1244_s24, %s1240_s5 }
  0x51   :  { %p1247_p5 = por %p1246_p4, %p1245_p3 }
  0x53   :  { %p1248_p6 = pnand %p1247_p5, %p1241_p2 }
  0x55   :  { %1251 = shalt.err (!%p1248_p6)
}
  0x56   :  { %87 = dma.hbm_to_vmem [thread:$0]  %s1637_s7, 16, %s85_s20, [#allocation9]  }
  0x57   :  { %s1355_s27 = smov [#allocation13]   ;;  %s1356_s23 = smov [#allocation16]  }
  0x58   :  { %s105_s9 = sshll.u32 %s1355_s27, 4  ;;  %s130_s29 = sshll.u32 %s1356_s23, 4  ;;  %s106_s9 = int_to_ptr.vmem [resolvable:$true] %s105_s9  ;;  %s131_s29 = int_to_ptr.vmem [resolvable:$true] %s130_s29 }
  0x59   :  { %s1260_s28 = scalar_lea.vmem %s106_s9, 256  ;;  %p1265_p8 = scmp.lt.s32.totalorder %s106_s9, %s106_s9 }
  0x5a   :  { %p1261_p7 = scmp.ne.s32.totalorder %s106_s9, %s1260_s28  ;;  %p1266_p9 = scmp.lt.s32.totalorder %s1260_s28, %s1260_s28 }
  0x5c   :  { %p1267_p10 = por %p1266_p9, %p1265_p8 }
  0x5e   :  { %p1268_p11 = pnand %p1267_p10, %p1261_p7 }
  0x60   :  { %1271 = shalt.err (!%p1268_p11)
}
  0x61   :  { %111 = dma.hbm_to_vmem [thread:$0]  %s1640_s10, 256, %s106_s9, [#allocation12], %s1347_s30, %s1347_s30, %s1348_s0  }
  0x62   :  { %s1280_s7 = scalar_lea.vmem %s131_s29, 16  ;;  %s1284_s1 = scalar_lea.vmem %s131_s29, 32 }
  0x63   :  { %p1281_p12 = scmp.ne.s32.totalorder %s131_s29, %s1280_s7  ;;  %p1285_p13 = scmp.lt.s32.totalorder %s131_s29, %s131_s29 }
  0x64   :  { %p1286_p0 = scmp.lt.s32.totalorder %s1284_s1, %s1280_s7 }
  0x66   :  { %p1287_p1 = por %p1286_p0, %p1285_p13 }
  0x68   :  { %p1288_p2 = pnand %p1287_p1, %p1281_p12 }
  0x6a   :  { %1291 = shalt.err (!%p1288_p2)
}
  0x6b   :  { %133 = dma.hbm_to_vmem [thread:$0]  %s1643_s13, 16, %s131_s29, [#allocation15]  }
  0x6c   :  { %s1357_s11 = smov [#allocation17]  }
  0x6d   :  { %s142_s21 = sshll.u32 %s1357_s11, 4  ;;  %s143_s21 = int_to_ptr.vmem [resolvable:$true] %s142_s21 }
  0x6e   :  { %s1300_s25 = scalar_lea.vmem %s143_s21, 16  ;;  %s1304_s5 = scalar_lea.vmem %s143_s21, 32 }
  0x6f   :  { %p1301_p3 = scmp.ne.s32.totalorder %s143_s21, %s1300_s25  ;;  %p1305_p4 = scmp.lt.s32.totalorder %s143_s21, %s143_s21 }
  0x70   :  { %p1306_p5 = scmp.lt.s32.totalorder %s1304_s5, %s1300_s25 }
  0x72   :  { %p1307_p6 = por %p1306_p5, %p1305_p4 }
  0x74   :  { %p1308_p7 = pnand %p1307_p6, %p1301_p3 }
  0x76   :  { %1311 = shalt.err (!%p1308_p7)
}
  0x77   :  { %145 = dma.hbm_to_vmem [thread:$0]  %s1645_s15, 16, %s143_s21, [#allocation18]  }
  0x78   :  { %1332 = dma.done.wait [#allocation3], 128  }
  0x79   :  { %1333 = vsyncadd [#allocation3], 4294967168 }
  0x7a   :  { %1334 = dma.done.wait [#allocation6], 272  }
  0x7b   :  { %1335 = vsyncadd [#allocation6], 4294967024 }
  0x7c   :  { %1336 = dma.done.wait [#allocation9], 32  }
  0x7d   :  { %1337 = vsyncadd [#allocation9], 4294967264 }
  0x7e   :  { %1338 = dma.done.wait [#allocation12], 272  }
  0x7f   :  { %1339 = vsyncadd [#allocation12], 4294967024 }
  0x80   :  { %1340 = dma.done.wait [#allocation15], 32  }
  0x81   :  { %1341 = vsyncadd [#allocation15], 4294967264 }
  0x82   :  { %1342 = dma.done.wait [#allocation18], 16  }
  0x83   :  { %1343 = vsyncadd [#allocation18], 4294967280  ;;  %v1358_v0 = vmov 0.0   ;;  %vm1359_vm0 = vmmov 0   ;;  %v182_v1 = vld [vmem:[#allocation5 + $0x8] sm:$0xff]  ;;  %v181_v2 = vld [vmem:[#allocation5] sm:$0xff] }
  0x84   :  { %1012 = vmatprep.subr.mxu0 %v1358_v0  ;;  %1016 = vmatprep.mubr.msk.f32.mxu0 %vm1359_vm0, %v1358_v0  ;;  %s1654_s0 = sld [smem:[#allocation27_spill]]  ;;  %vm190_vm1 = vcmask 130048   ;;  %v268_v4 = vld [vmem:[%s1634_s4 + $0x18] sm:$0xff]  ;;  %v267_v5 = vld [vmem:[%s1634_s4 + $0x10] sm:$0xff]  ;;  %v266_v6 = vld [vmem:[%s1634_s4 + $0x8] sm:$0xff]  ;;  %vm276_vm2 = vcmask 261120  }
  0x85   :  { %1019 = vmatprep.subr.mxu1 %v1358_v0  ;;  %1027 = vmatprep.mubr.msk.f32.mxu1 %vm1359_vm0, %v1358_v0  ;;  %v265_v7 = vld [vmem:[%s1634_s4] sm:$0xff]  ;;  %v354_v8 = vld [vmem:[%s1636_s6 + $0x18] sm:$0xff]  ;;  %v353_v9 = vld [vmem:[%s1636_s6 + $0x10] sm:$0xff]  ;;  %vm934_vm3 = vcmask 64512  }
  0x86   :  { %1013 = vmatpush3.msra.mxu0 %v182_v1  ;;  %1020 = vmatpush3.msra.mxu1 %v268_v4  ;;  %v956_v10 = vld [vmem:[#allocation7] ss:$0 sm:$0xff]  ;;  %v352_v15 = vld [vmem:[%s1636_s6 + $0x8] sm:$0xff]  ;;  %v351_v16 = vld [vmem:[%s1636_s6] sm:$0xff] }
  0x87   :  { %1014 = vmatprep.subr.mxu0 %v1358_v0  ;;  %1021 = vmatprep.subr.mxu1 %v1358_v0  ;;  %v439_v17 = vld [vmem:[%s1638_s8 + $0x18] sm:$0xff]  ;;  %v522_v23 = vld [vmem:[#allocation13 + $0x8] sm:$0xff]  ;;  %v521_v24 = vld [vmem:[#allocation13] sm:$0xff] }
  0x88   :  { %1015 = vmatpush3.msra.mxu0 %v181_v2  ;;  %1022 = vmatpush3.msra.mxu1 %v267_v5  ;;  %v958_v18 = vld [vmem:[#allocation8] ss:$0 sm:$0xff]  ;;  %v520_v25 = vld [vmem:[#allocation2] sm:$0xff]  ;;  %v438_v26 = vld [vmem:[%s1638_s8 + $0x10] sm:$0xff] }
  0x89   :  { %1030 = vmatprep.subr.mxu0 %v1358_v0  ;;  %1023 = vmatprep.subr.mxu1 %v1358_v0  ;;  %v437_v27 = vld [vmem:[%s1638_s8 + $0x8] sm:$0xff]  ;;  %v607_v28 = vld [vmem:[%s1642_s12 + $0x18] sm:$0xff]  ;;  %v436_v29 = vld [vmem:[%s1638_s8] sm:$0xff] }
  0x8a   :  { %v180_v3 = vld [vmem:[%s1654_s0] sm:$0xff]  ;;  %1024 = vmatpush3.msra.mxu1 %v266_v6  ;;  %v606_v30 = vld [vmem:[%s1642_s12 + $0x10] sm:$0xff]  ;;  %v605_v31 = vld [vmem:[%s1642_s12 + $0x8] sm:$0xff] }
  0x8b   :  { %1017 = vmatmul.mubr.msk.f32.vlgmr.msra.gmra.mxu0 %vm190_vm1, %v180_v3  ;;  %1025 = vmatprep.subr.mxu1 %v1358_v0  ;;  %v604_v32 = vld [vmem:[%s1642_s12] sm:$0xff]  ;;  %v960_v33 = vld [vmem:[#allocation10] ss:$0 sm:$0xff]  ;;  %v964_v37 = vld [vmem:[#allocation14] ss:$0 sm:$0xff] }
  0x8c   :  { %1038 = vmatprep.mubr.msk.f32.mxu0 %vm1359_vm0, %v1358_v0  ;;  %1026 = vmatpush3.msra.mxu1 %v265_v7  ;;  %v692_v43 = vld [vmem:[%s1644_s14 + $0x18] sm:$0xff]  ;;  %v691_v44 = vld [vmem:[%s1644_s14 + $0x10] sm:$0xff]  ;;  %v690_v45 = vld [vmem:[%s1644_s14 + $0x8] sm:$0xff] }
  0x8d   :  { %1041 = vmatprep.subr.mxu1 %v1358_v0  ;;  %1031 = vmatpush3.msra.mxu0 %v354_v8  ;;  %v689_v46 = vld [vmem:[%s1644_s14] sm:$0xff]  ;;  %v777_v47 = vld [vmem:[%s1646_s16 + $0x18] sm:$0xff]  ;;  %v966_v50 = vld [vmem:[#allocation16] ss:$0 sm:$0xff] }
  0x8e   :  { %1032 = vmatprep.subr.mxu0 %v1358_v0  ;;  %v962_v52 = vld [vmem:[#allocation11] ss:$0 sm:$0xff]  ;;  %v776_v57 = vld [vmem:[%s1646_s16 + $0x10] sm:$0xff]  ;;  %v775_v58 = vld [vmem:[%s1646_s16 + $0x8] sm:$0xff] }
  0x8f   :  { %1033 = vmatpush3.msra.mxu0 %v353_v9  ;;  %v774_v59 = vld [vmem:[%s1646_s16] sm:$0xff]  ;;  %v968_v60 = vld [vmem:[#allocation17] ss:$0 sm:$0xff]  ;;  %s1360_s16 = smov [#allocation19]  }
  0x90   :  { %1034 = vmatprep.subr.mxu0 %v1358_v0  ;;  %v970_v2 = vld [vmem:[%s1647_s17] ss:$0 sm:$0xff]  ;;  %s942_s13 = sshll.u32 %s1360_s16, 4  ;;  %s943_s13 = int_to_ptr.vmem [resolvable:$true] %s942_s13 }
  0x91   :  { %1035 = vmatpush3.msra.mxu0 %v352_v15  ;;  %s1312_s15 = scalar_lea.vmem %s943_s13, 128  ;;  %p1317_p9 = scmp.lt.s32.totalorder %s943_s13, %s943_s13 }
  0x92   :  { %1036 = vmatprep.subr.mxu0 %v1358_v0  ;;  %p1313_p8 = scmp.ne.s32.totalorder %s943_s13, %s1312_s15  ;;  %p1318_p10 = scmp.lt.s32.totalorder %s1312_s15, %s1312_s15 }
  0x93   :  { %1037 = vmatpush3.msra.mxu0 %v351_v16 }
  0x94   :  { %1052 = vmatprep.subr.mxu0 %v1358_v0  ;;  %p1319_p11 = por %p1318_p10, %p1317_p9 }
  0x96   :  { %p1320_p12 = pnand %p1319_p11, %p1313_p8 }
 0x14b   :  { %v260_v11 = vpop.f32.mrf.mxu0 }
 0x14c   :  { %v261_v12 = vadd.f32 %v956_v10, %v260_v11 }
 0x14d   :  { %v1018_v13 = vpop.f32.mrf.mxu0 }
 0x14e   :  { %v264_v14 = vmax.f32 %v261_v12, 0.0 }
 0x150   :  { %1028 = vmatmul.mubr.msk.f32.vlgmr.msra.gmra.mxu1 %vm276_vm2, %v264_v14 }
 0x151   :  { %1049 = vmatprep.mubr.msk.f32.mxu1 %vm1359_vm0, %v1358_v0  ;;  %1042 = vmatpush3.msra.mxu1 %v439_v17 }
 0x152   :  { %1043 = vmatprep.subr.mxu1 %v1358_v0 }
 0x153   :  { %1044 = vmatpush3.msra.mxu1 %v438_v26 }
 0x154   :  { %1045 = vmatprep.subr.mxu1 %v1358_v0 }
 0x155   :  { %1046 = vmatpush3.msra.mxu1 %v437_v27 }
 0x156   :  { %1047 = vmatprep.subr.mxu1 %v1358_v0 }
 0x157   :  { %1048 = vmatpush3.msra.mxu1 %v436_v29 }
 0x158   :  { %1070 = vmatprep.subr.mxu1 %v1358_v0 }
 0x210   :  { %v346_v19 = vpop.f32.mrf.mxu1 }
 0x211   :  { %v347_v20 = vadd.f32 %v958_v18, %v346_v19 }
 0x212   :  { %v1029_v21 = vpop.f32.mrf.mxu1 }
 0x213   :  { %v350_v22 = vmax.f32 %v347_v20, 0.0 }
 0x215   :  { %1039 = vmatmul.mubr.msk.f32.vlgmr.msra.gmra.mxu0 %vm276_vm2, %v350_v22 }
 0x216   :  { %1053 = vmatpush3.msra.mxu0 %v522_v23  ;;  %1056 = vmatprep.mubr.msk.f32.mxu0 %vm1359_vm0, %v1358_v0 }
 0x217   :  { %1054 = vmatprep.subr.mxu0 %v1358_v0 }
 0x218   :  { %1055 = vmatpush3.msra.mxu0 %v521_v24 }
 0x219   :  { %1057 = vmatmul.mubr.msk.f32.vlgmr.msra.gmra.mxu0 %vm190_vm1, %v520_v25  ;;  %1059 = vmatprep.subr.mxu0 %v1358_v0 }
 0x21a   :  { %1067 = vmatprep.mubr.msk.f32.mxu0 %vm1359_vm0, %v1358_v0  ;;  %1060 = vmatpush3.msra.mxu0 %v607_v28 }
 0x21b   :  { %1061 = vmatprep.subr.mxu0 %v1358_v0 }
 0x21c   :  { %1062 = vmatpush3.msra.mxu0 %v606_v30 }
 0x21d   :  { %1063 = vmatprep.subr.mxu0 %v1358_v0 }
 0x21e   :  { %1064 = vmatpush3.msra.mxu0 %v605_v31 }
 0x21f   :  { %1065 = vmatprep.subr.mxu0 %v1358_v0 }
 0x220   :  { %1066 = vmatpush3.msra.mxu0 %v604_v32 }
 0x221   :  { %1081 = vmatprep.subr.mxu0 %v1358_v0 }
 0x2d5   :  { %v431_v34 = vpop.f32.mrf.mxu0 }
 0x2d6   :  { %v432_v35 = vadd.f32 %v960_v33, %v431_v34 }
 0x2d7   :  { %v1040_v36 = vpop.f32.mrf.mxu0 }
 0x2d8   :  { %v435_v38 = vmax.f32 %v432_v35, 0.0 }
 0x2d9   :  { %v599_v39 = vpop.f32.mrf.mxu0 }
 0x2da   :  { %v600_v40 = vadd.f32 %v964_v37, %v599_v39  ;;  %1050 = vmatmul.mubr.msk.f32.vlgmr.msra.gmra.mxu1 %vm276_vm2, %v435_v38 }
 0x2db   :  { %v1058_v41 = vpop.f32.mrf.mxu0  ;;  %1078 = vmatprep.mubr.msk.f32.mxu1 %vm1359_vm0, %v1358_v0  ;;  %1071 = vmatpush3.msra.mxu1 %v692_v43 }
 0x2dc   :  { %v603_v42 = vmax.f32 %v600_v40, 0.0  ;;  %1072 = vmatprep.subr.mxu1 %v1358_v0 }
 0x2dd   :  { %1073 = vmatpush3.msra.mxu1 %v691_v44 }
 0x2de   :  { %1068 = vmatmul.mubr.msk.f32.vlgmr.msra.gmra.mxu0 %vm276_vm2, %v603_v42  ;;  %1074 = vmatprep.subr.mxu1 %v1358_v0 }
 0x2df   :  { %1089 = vmatprep.mubr.msk.f32.mxu0 %vm1359_vm0, %v1358_v0  ;;  %1075 = vmatpush3.msra.mxu1 %v690_v45 }
 0x2e0   :  { %1076 = vmatprep.subr.mxu1 %v1358_v0  ;;  %1082 = vmatpush3.msra.mxu0 %v777_v47 }
 0x2e1   :  { %1077 = vmatpush3.msra.mxu1 %v689_v46  ;;  %1083 = vmatprep.subr.mxu0 %v1358_v0 }
 0x2e2   :  { %1092 = vmatprep.subr.mxu1 %v1358_v0  ;;  %1084 = vmatpush3.msra.mxu0 %v776_v57 }
 0x2e3   :  { %1085 = vmatprep.subr.mxu0 %v1358_v0 }
 0x2e4   :  { %1086 = vmatpush3.msra.mxu0 %v775_v58 }
 0x2e5   :  { %1087 = vmatprep.subr.mxu0 %v1358_v0 }
 0x2e6   :  { %1088 = vmatpush3.msra.mxu0 %v774_v59 }
 0x39a   :  { %v516_v48 = vpop.f32.mrf.mxu1 }
 0x39b   :  { %v517_v56 = vadd.f32 %v962_v52, %v516_v48 }
 0x39c   :  { %v1051_v49 = vpop.f32.mrf.mxu1 }
 0x39e   :  { %v684_v51 = vpop.f32.mrf.mxu0 }
 0x39f   :  { %v685_v53 = vadd.f32 %v966_v50, %v684_v51 }
 0x3a0   :  { %v1069_v54 = vpop.f32.mrf.mxu0 }
 0x3a1   :  { %v688_v55 = vmax.f32 %v685_v53, 0.0 }
 0x3a3   :  { %1079 = vmatmul.mubr.msk.f32.vlgmr.msra.gmra.mxu1 %vm276_vm2, %v688_v55 }
 0x3a4   :  { %1093 = vmatpush3.xpose.msk.msra.mxu1 %vm190_vm1, %v517_v56  ;;  %1094 = vmatprep.mubr.msk.f32.mxu1 %vm1359_vm0, %v1358_v0 }
 0x463   :  { %v769_v61 = vpop.f32.mrf.mxu1 }
 0x464   :  { %v770_v62 = vadd.f32 %v968_v60, %v769_v61 }
 0x465   :  { %v1080_v63 = vpop.f32.mrf.mxu1 }
 0x466   :  { %v773_v1 = vmax.f32 %v770_v62, 0.0 }
 0x468   :  { %1090 = vmatmul.mubr.msk.f32.vlgmr.msra.gmra.mxu0 %vm276_vm2, %v773_v1 }
 0x528   :  { %v854_v3 = vpop.f32.mrf.mxu0 }
 0x529   :  { %v855_v4 = vadd.f32 %v970_v2, %v854_v3 }
 0x52a   :  { %v1091_v5 = vpop.f32.mrf.mxu0 }
 0x52b   :  { %1095 = vmatmul.mubr.msk.f32.vlgmr.msra.gmra.mxu1 %vm190_vm1, %v855_v4 }
 0x5eb   :  { %v930_v0 = vpop.f32.mrf.mxu1 }
 0x5ec   :  { %935 = vst.msk [vmem:[#allocation19] sm:$0xff] %vm934_vm3, %v930_v0 }
 0x5ed   :  { %v1096_v6 = vpop.f32.mrf.mxu1 }
 0x5ee   :  { %1323 = shalt.err (!%p1320_p12)
}
 0x5ef   :  { %945 = dma.vmem_to_hbm [thread:$0]  %s943_s13, 128, %s1648_s18, [#allocation4]  }
 0x5f0   :  { %1344 = dma.done.wait [#allocation4], 128  }
 0x5f1   :  { %1345 = vsyncadd [#allocation4], 4294967168 }
 0x5f2   :  { %949 = vsyncpa [#allocation3], 1 }
 0x5f3   :  { %950 = vsyncpa [#allocation6], 1 }
 0x5f4   :  { %951 = vsyncpa [#allocation9], 1 }
 0x5f5   :  { %952 = vsyncpa [#allocation12], 1 }
 0x5f6   :  { %953 = vsyncpa [#allocation15], 1 }
 0x5f7   :  { %954 = vsyncpa [#allocation18], 1 }
 0x5f8   :  { %955 = vsyncpa [#allocation4], 1 }

</bundles_post_ra>
